<compile_context>
chip_gen: v5e
topology: v5e:2x2
jax: 0.10.0
libtpu: 0.0.40
codegen_flags: <defaults>
</compile_context>

<pallas_src>
import functools

import numpy as np
import jax
import jax.numpy as jnp
from jax.experimental import pallas as pl
from jax.experimental.pallas import tpu as pltpu


# Explicit scoped-VMEM limit: comfortably under v7x's 64 MiB physical VMEM and
# well above v5e's 16 MiB *default* scoped limit (physical there is 128 MiB).
_VMEM_LIMIT_BYTES = 48 * 1024 * 1024


def _cdiv(a, b):
    return -(-a // b)


def _rms_norm_kernel(x_ref, w_ref, o_ref, *, eps):
    # x_ref: (TM, D) input rows, w_ref: (1, D) weight, o_ref: (TM, D) output.
    x = x_ref[...]
    xf = x.astype(jnp.float32)
    # f32 accumulation of the row-wise mean of squares (safe for bf16/f16 in).
    var = jnp.mean(xf * xf, axis=-1, keepdims=True)          # (TM, 1) f32
    inv = jax.lax.rsqrt(var + eps)                            # EUP rsqrt

    if x.dtype == jnp.bfloat16:
        # bf16 VALU path (v6e/v7x): scale in the input dtype, avoid a second
        # full (TM, D) f32 temporary and the extra up/down casts.
        # NOTE: differs from the f32-normalize reference by ~1 ulp in bf16.
        o_ref[...] = ((x * inv.astype(x.dtype))
                      * w_ref[...].astype(x.dtype)).astype(o_ref.dtype)
    else:
        # f32 / f16 inputs: keep the normalization + weight multiply in f32.
        o_ref[...] = (xf * inv * w_ref[...].astype(jnp.float32)).astype(o_ref.dtype)


def _pick_row_tile(M, D, itemsize):
    """Row-tile TM: multiple of the sublane pack, block sized in input dtype."""
    pack = max(8, 32 // itemsize)            # 8 for f32, 16 for bf16/f16, 32 for int8
    # Estimated VMEM footprint per block byte:
    #   2x input + 2x output double buffers (input dtype) + ~2 TM*D f32 temps.
    mult = 4 + 2 * max(1, 4 // itemsize)
    # Keep the estimated footprint under the explicit VMEM limit with headroom.
    budget = (_VMEM_LIMIT_BYTES - 8 * 1024 * 1024) // mult
    per_block = min(8 * 1024 * 1024, budget)

    tm = max(pack, (per_block // (D * itemsize)) // pack * pack)
    # Never make the block taller than the (pack-rounded) row count.
    tm = min(tm, _cdiv(M, pack) * pack)
    # v7x has 2 TensorCores sharing the "parallel" grid axis: keep >= 2 grid
    # steps whenever there are enough rows to split (no effect on v5e/v6e).
    if tm > pack and _cdiv(M, tm) < 2:
        tm = max(pack, _cdiv(_cdiv(M, 2), pack) * pack)
    return tm


def exllama_rms_norm(hidden_states, weight, eps):
    """RMSNorm over the last axis: x * rsqrt(mean(x^2) + eps) * weight."""
    orig_shape = hidden_states.shape
    D = orig_shape[-1]
    M = int(np.prod(orig_shape[:-1])) if orig_shape[:-1] else 1
    itemsize = jnp.dtype(hidden_states.dtype).itemsize

    x2 = hidden_states.reshape(M, D)
    w2 = weight.reshape(1, D)

    TM = _pick_row_tile(M, D, itemsize)
    grid = (_cdiv(M, TM),)   # ragged last block handled by Pallas (no host pad)

    cost = pl.CostEstimate(
        flops=3 * M * D,            # square, scale by inv, scale by weight
        transcendentals=M,          # one rsqrt per row
        bytes_accessed=2 * M * D * itemsize + D * itemsize,
    )

    out = pl.pallas_call(
        functools.partial(_rms_norm_kernel, eps=float(eps)),
        out_shape=jax.ShapeDtypeStruct((M, D), hidden_states.dtype),
        grid=grid,
        in_specs=[
            pl.BlockSpec((TM, D), lambda i: (i, 0)),
            pl.BlockSpec((1, D), lambda i: (0, 0)),
        ],
        out_specs=pl.BlockSpec((TM, D), lambda i: (i, 0)),
        compiler_params=pltpu.CompilerParams(
            dimension_semantics=("parallel",),
            vmem_limit_bytes=_VMEM_LIMIT_BYTES,
        ),
        cost_estimate=cost,
    )(x2, w2)

    return out.reshape(orig_shape)


def _ref_rms_norm(x, weight, eps):
    xf = x.astype(jnp.float32)
    var = jnp.mean(xf * xf, axis=-1, keepdims=True)
    return ((xf * jax.lax.rsqrt(var + eps)) * weight.astype(jnp.float32)).astype(x.dtype)


if __name__ == "__main__":
    eps = 1e-6
    key = jax.random.PRNGKey(0)
    k_x, k_w, k_x2 = jax.random.split(key, 3)

    # Small ExLlamaRMSNorm-shaped example: batch=2, seq=8, hidden=256.
    B, S, D = 2, 8, 256
    x = jax.random.normal(k_x, (B, S, D), jnp.float32)
    weight = 1.0 + 0.1 * jax.random.normal(k_w, (D,), jnp.float32)

    out = jax.block_until_ready(exllama_rms_norm(x, weight, eps))
    ref = _ref_rms_norm(x, weight, eps)
    assert out.shape == (B, S, D), out.shape
    np.testing.assert_allclose(np.asarray(out), np.asarray(ref), rtol=1e-5, atol=1e-5)

    # Second check with a row count that does NOT divide the row tile, to
    # exercise the ragged last-block path (no host-side pad/slice).
    B2, S2 = 2, 5   # M = 10 rows
    x2 = jax.random.normal(k_x2, (B2, S2, D), jnp.float32)
    out2 = jax.block_until_ready(exllama_rms_norm(x2, weight, eps))
    ref2 = _ref_rms_norm(x2, weight, eps)
    np.testing.assert_allclose(np.asarray(out2), np.asarray(ref2), rtol=1e-5, atol=1e-5)

    print("KERNEL_OK")
</pallas_src>

<mosaic_0001>
module attributes {stable_mosaic.version = 11 : i64} {
  func.func @_rms_norm_kernel(%arg0: i32, %arg1: memref<8x256xf32, #tpu.memory_space<vmem>>, %arg2: memref<1x256xf32, #tpu.memory_space<vmem>>, %arg3: memref<8x256xf32, #tpu.memory_space<vmem>>) attributes {dimension_semantics = [#tpu.dimension_semantics<parallel>], iteration_bounds = array<i64: 2>, scalar_prefetch = 0 : i64, scratch_operands = 0 : i64, tpu.core_type = #tpu.core_type<tc>, window_params = [{transform_indices = @transform_0, window_bounds = array<i64: 8, 256>}, {pipeline_mode = #tpu.pipeline_mode<synchronous>, transform_indices = @transform_1, window_bounds = array<i64: 1, 256>}, {transform_indices = @transform_2, window_bounds = array<i64: 8, 256>}]} {
    %c0 = arith.constant 0 : index
    %c0_0 = arith.constant 0 : index
    %0 = vector.load %arg1[%c0, %c0_0] : memref<8x256xf32, #tpu.memory_space<vmem>>, vector<8x256xf32>
    %1 = arith.mulf %0, %0 : vector<8x256xf32>
    %cst = arith.constant dense<0.000000e+00> : vector<8xf32>
    %2 = vector.multi_reduction <add>, %1, %cst [1] : vector<8x256xf32> to vector<8xf32>
    %3 = vector.shape_cast %2 : vector<8xf32> to vector<8x1xf32>
    %cst_1 = arith.constant 2.560000e+02 : f32
    %4 = vector.broadcast %cst_1 : f32 to vector<8x1xf32>
    %5 = arith.divf %3, %4 : vector<8x1xf32>
    %cst_2 = arith.constant 9.99999997E-7 : f32
    %6 = vector.broadcast %cst_2 : f32 to vector<8x1xf32>
    %7 = arith.addf %5, %6 : vector<8x1xf32>
    %8 = math.rsqrt %7 : vector<8x1xf32>
    %9 = vector.broadcast %8 : vector<8x1xf32> to vector<8x256xf32>
    %10 = arith.mulf %0, %9 : vector<8x256xf32>
    %c0_3 = arith.constant 0 : index
    %c0_4 = arith.constant 0 : index
    %11 = vector.load %arg2[%c0_3, %c0_4] : memref<1x256xf32, #tpu.memory_space<vmem>>, vector<1x256xf32>
    %12 = vector.broadcast %11 : vector<1x256xf32> to vector<8x256xf32>
    %13 = arith.mulf %10, %12 : vector<8x256xf32>
    %c0_5 = arith.constant 0 : index
    %c0_6 = arith.constant 0 : index
    %14 = vector.load %arg3[%c0_5, %c0_6] : memref<8x256xf32, #tpu.memory_space<vmem>>, vector<8x256xf32>
    tpu.vector_store %arg3[%c0_5, %c0_6], %13 {strides = array<i32>} : memref<8x256xf32, #tpu.memory_space<vmem>>, vector<8x256xf32>,
    return
  }
  func.func @transform_0(%arg0: i32) -> (i32, i32) {
    %c0_i32 = arith.constant 0 : i32
    %c0_i32_0 = arith.constant 0 : i32
    return %arg0, %c0_i32 : i32, i32
  }
  func.func @transform_1(%arg0: i32) -> (i32, i32) {
    %c0_i32 = arith.constant 0 : i32
    %c0_i32_0 = arith.constant 0 : i32
    %c0_i32_1 = arith.constant 0 : i32
    return %c0_i32, %c0_i32_0 : i32, i32
  }
  func.func @transform_2(%arg0: i32) -> (i32, i32) {
    %c0_i32 = arith.constant 0 : i32
    %c0_i32_0 = arith.constant 0 : i32
    return %arg0, %c0_i32 : i32, i32
  }
}

</mosaic_0001>

<bundles_post_ra>
// kernel: tpu_custom_call.1
= control target key start
LH: loop header
LB: loop body
LE: loop exit
PB: predicated region body
PF: predicated region fallthrough
CT: control target
= control target key end

     0   :  { %7 = vsyncpa [#allocation3], 0  ;;  %s683_s0 = inlined_call_operand.hbm [shape: f32[16,256], index: 0, kind: input, shape index: {}]   ;;  %s684_s1 = inlined_call_operand.hbm [shape: f32[1,256], index: 1, kind: input, shape index: {}]   ;;  %s685_s2 = inlined_call_operand.hbm [shape: f32[16,256], index: 2, kind: output, shape index: {}]  }
   0x1   :  { %9 = vsyncpa [#allocation3 + $0x1], 0 }
   0x2   :  { %10 = vsyncpa [#allocation6], 0 }
   0x3   :  { %11 = vsyncpa [#allocation4], 0 }
   0x4   :  { %13 = vsyncpa [#allocation4 + $0x1], 0  ;;  %s541_s9 = smov 0   ;;  %s543_s10 = smov 0  }
   0x5   :  { %s545_s11 = smov 0   ;;  %s547_s12 = smov 0  }
   0x6 LB: > { %s562_s13 = sadd.s32 4294967295, %s522_s12   ;;  %s312_s14 = sadd.s32 4294967294, %s522_s12   ;;  %s522_s12 = sphi %s547_s12, %s695_s12   ;;  %s518_s11 = sphi %s545_s11, %s694_s11   ;;  %s514_s10 = sphi %s543_s10, %s693_s10   ;;  %s510_s9 = sphi %s541_s9, %s692_s9  }
   0x7   : > { %p39_p0 = scmp.ne.s32.totalorder %s514_s10, %s510_s9  ;;  %p40_p1 = scmp.eq.s32.totalorder %s562_s13, 0 }
   0x8   : > { %p84_p2 = scmp.eq.s32.totalorder %s562_s13, 1  ;;  %p90_p3 = scmp.eq.s32.totalorder %s312_s14, 1 }
   0x9   : > { %p571_p4 = por %p40_p1, %p39_p0  ;;  %p313_p5 = scmp.ge.s32.totalorder %s522_s12, 1 }
   0xa   : > { %p576_p6 = por %p90_p3, %p39_p0  ;;  %p97_p7 = scmp.lt.s32.totalorder %s522_s12, 3 }
   0xb   : > { %s109_s19 = sshll.u32 %s684_s1, 4  ;;  %s524_s21 = smov [#allocation5]   ;;  %s110_s19 = int_to_ptr.hbm [resolvable:$true] %s109_s19 }
   0xc   : > { %p584_p8 = pnand %p313_p5, %p97_p7  ;;  %s111_s22 = sshll.u32 %s524_s21, 4  ;;  %s112_s22 = int_to_ptr.vmem [resolvable:$true] %s111_s22 }
   0xd   : > { %s594_s23 = sadd.s32 1, %s522_s12   ;;  %s26_s24 = sadd.s32 1, %s518_s11 }
   0xe   : > { %p338_p10 = pneg %p584_p8  ;;  %s23_s25 = ssub.s32 %s522_s12, %s594_s23 }
   0xf   : > { %p24_p12 = scmp.eq.s32.totalorder %s23_s25, 0  ;;  %p33_p13 = scmp.ne.s32.totalorder %s518_s11, %s514_s10 }
  0x10   : > { %p339_p11 = pnand %p338_p10, %p40_p1  ;;  %p34_p0 = scmp.eq.s32.totalorder %s522_s12, 0 }
  0x11   : > { %s603_s26 = scalar_select %p24_p12, %s518_s11, %s26_s24  }
  0x12   : > { %341 = dma.hbm_to_vmem [thread:$0]  (!%p339_p11), %s110_s19, 32, %s112_s22, [#allocation6]  }
  0x13   : > { %p607_p3 = por %p84_p2, %p33_p13  ;;  %p351_p5 = scmp.lt.s32.totalorder %s522_s12, 2 }
  0x14   : > { %s122_s28 = sand.u32 1, %s518_s11   ;;  %s328_s29 = sshll.u32 %s522_s12, 4 }
  0x15   : > { %p35_p7 = por %p34_p0, %p33_p13  ;;  %s316_s30 = sshll.u32 %s122_s28, 4 }
  0x16   : > { %s131_s5 = scalar_lea.hbm %s683_s0, %s328_s29  ;;  %s126_s7 = scalar_lea.vmem [#allocation2], %s316_s30 }
  0x17   : > { %s133_s6 = sshll.u32 %s131_s5, 4  ;;  %s135_s8 = sshll.u32 %s126_s7, 4  ;;  %s134_s6 = int_to_ptr.hbm [resolvable:$true] %s133_s6  ;;  %s136_s8 = int_to_ptr.vmem [resolvable:$true] %s135_s8 }
  0x18   : > { %p617_p10 = pnand %p351_p5, %p35_p7  ;;  %s123_s17 = scalar_lea.sflag [#allocation3], %s122_s28 }
  0x19   : > { %s422_s18 = sshra.s32 %s134_s6, 4  ;;  %s429_s24 = scalar_lea.hbm %s683_s0, 32  ;;  %s423_s18 = int_to_ptr.hbm [resolvable:$true] %s422_s18 }
  0x1a   : > { %s424_s19 = scalar_lea.hbm %s423_s18, 16  ;;  %p426_p11 = pneg %p617_p10 }
  0x1b   : > { %p425_p2 = scmp.ne.s32.totalorder %s423_s18, %s424_s19  ;;  %p430_p0 = scmp.lt.s32.totalorder %s423_s18, %s683_s0 }
  0x1c   : > { %p431_p5 = scmp.lt.s32.totalorder %s429_s24, %s424_s19 }
  0x1d   : > { %p427_p12 = pnand %p426_p11, %p425_p2 }
  0x1e   : > { %p432_p7 = por %p431_p5, %p430_p0 }
  0x1f   : > { %p428_p13 = pneg %p427_p12 }
  0x21   : > { %p433_p9 = pnand %p432_p7, %p428_p13 }
  0x23   : > { %436 = shalt.err (!%p433_p9)
}
  0x24   : > { %345 = dma.hbm_to_vmem [thread:$0]  (!%p617_p10), %s134_s6, 256, %s136_s8, %s123_s17  }
  0x25   : > { %144 = sbr.rel (%p584_p8) target bundleno = 196 (0xc4), region = 28  ;;  %s634_s28 = sand.u32 (!%p584_p8), 1, %s514_s10  }
  0x26   : > { %s320_s30 = sshll.u32 (!%p584_p8), %s634_s28, 4  ;;  %s147_s3 = scalar_lea.sflag (!%p584_p8), [#allocation3], %s634_s28 }
  0x27   : > { %s150_s4 = scalar_lea.vmem (!%p584_p8), [#allocation2], %s320_s30 }
  0x2a   : > { %497 = dma.done.wait (%p571_p4), %s147_s3, 256  }
  0x2b   : > { %499 = vsyncadd (%p571_p4), %s147_s3, 4294967040 }
  0x2c   : > { %501 = dma.done.wait (%p40_p1), [#allocation6], 32  }
  0x2d   : > { %503 = vsyncadd (%p40_p1), [#allocation6], 4294967264  ;;  %v177_v0 = vld [vmem:[%s150_s4] sm:$0xff]  ;;  %v178_v1 = vld [vmem:[%s150_s4 + $0x8] sm:$0xff]  ;;  %v525_v5 = vmov 256.0   ;;  %s329_s15 = sshll.u32 %s562_s13, 4 }
  0x2e   : > { %v179_v2 = vmul.f32 %v177_v0, %v177_v0  ;;  %v180_v3 = vmul.f32 %v178_v1, %v178_v1  ;;  %388 = vrcp.f32 %v525_v5  ;;  %v205_v20 = vld [vmem:[#allocation5] sm:$0x3]  ;;  %s227_s6 = scalar_lea.hbm %s685_s2, %s329_s15  ;;  %s176_s7 = scalar_lea.vmem [#allocation7], %s320_s30 }
  0x2f   : > { %v207_v22 = vperm.slane %v205_v20, 0  ;;  %v208_v23 = vperm.slane %v205_v20, 1  ;;  %s229_s13 = sshll.u32 %s176_s7, 4  ;;  %s231_s8 = sshll.u32 %s227_s6, 4  ;;  %s230_s13 = int_to_ptr.vmem [resolvable:$true] %s229_s13  ;;  %s232_s8 = int_to_ptr.hbm [resolvable:$true] %s231_s8 }
  0x30   : > { %v181_v4 = vadd.f32 %v180_v3, %v179_v2  ;;  %s216_s14 = scalar_lea.sflag [#allocation4], %s634_s28  ;;  %s466_s17 = sshra.s32 %s232_s8, 4  ;;  %s467_s17 = int_to_ptr.hbm [resolvable:$true] %s466_s17 }
  0x31   : > { %s468_s18 = scalar_lea.hbm %s467_s17, 16  ;;  %s472_s22 = scalar_lea.hbm %s685_s2, 32 }
  0x32   : > { %182 = vadd.xlane.f32.xlu0 %v181_v4  ;;  %p469_p1 = scmp.ne.s32.totalorder %s467_s17, %s468_s18  ;;  %p473_p9 = scmp.lt.s32.totalorder %s467_s17, %s685_s2 }
  0x33   : > { %p474_p10 = scmp.lt.s32.totalorder %s472_s22, %s468_s18 }
  0x34   : > { %v389_v6 = vpop.eup %388  ;;  %p470_p4 = pnand %p469_p1, %p607_p3 }
  0x35   : > { %v185_v7 = vmul.f32 256.0, %v389_v6  ;;  %vm189_vm0 = vweird.f32 %v389_v6  ;;  %p475_p2 = por %p474_p10, %p473_p9 }
  0x36   : > { %p471_p8 = pneg %p470_p4 }
  0x37   : > { %v186_v8 = vsub.f32 1.0, %v185_v7 }
  0x38   : > { %p476_p11 = pnand %p475_p2, %p471_p8 }
  0x39   : > { %v187_v9 = vmul.f32 %v389_v6, %v186_v8 }
  0x3b   : > { %v188_v10 = vadd.f32 %v389_v6, %v187_v9 }
  0x3d   : > { %v190_v11 = vsel %vm189_vm0, %v389_v6, %v188_v10 }
  0xa5   : > { %v183_v12 = vpop.xlane.xlu0 %182 }
  0xa6   : > { %v191_v13 = vmul.f32 %v190_v11, %v183_v12 }
  0xa8   : > { %v192_v14 = vadd.f32 1e-06, %v191_v13 }
  0xaa   : > { %390 = vrsqrt.f32 %v192_v14  ;;  %vm199_vm2 = vweird.f32 %v192_v14 }
  0xb0   : > { %v391_v15 = vpop.eup %390 }
  0xb1   : > { %v194_v16 = vmul.f32 %v391_v15, %v192_v14  ;;  %vm200_vm1 = vweird.f32 %v391_v15 }
  0xb2   : > { %vm201_vm3 = vmor %vm199_vm2, %vm200_vm1 }
  0xb3   : > { %v195_v17 = vmul.f32 %v391_v15, %v194_v16 }
  0xb5   : > { %v196_v18 = vmul.f32 0.5, %v195_v17 }
  0xb7   : > { %v197_v19 = vsub.f32 1.5, %v196_v18 }
  0xb9   : > { %v198_v21 = vmul.f32 %v391_v15, %v197_v19 }
  0xbb   : > { %v202_v24 = vsel %vm201_vm3, %v391_v15, %v198_v21 }
  0xbc   : > { %v203_v25 = vmul.f32 %v202_v24, %v177_v0  ;;  %v204_v26 = vmul.f32 %v202_v24, %v178_v1 }
  0xbe   : > { %v211_v27 = vmul.f32 %v207_v22, %v203_v25  ;;  %v212_v28 = vmul.f32 %v208_v23, %v204_v26 }
  0xc0   : > { %213 = vst [vmem:[%s176_s7] sm:$0xff] %v211_v27 }
  0xc1   : > { %214 = vst [vmem:[%s176_s7 + $0x8] sm:$0xff] %v212_v28 }
  0xc2   : > { %479 = shalt.err (!%p476_p11)
}
  0xc3   : > { %336 = dma.vmem_to_hbm [thread:$0]  (%p607_p3), %s230_s13, 256, %s232_s8, %s216_s14  }
  0xc4 PF: > { %s243_s29 = sand.u32 1, %s510_s9   ;;  %p691_p12 = scmp.ge.s32.totalorder %s522_s12, 2 }
  0xc5   : > { %s244_s28 = scalar_lea.sflag [#allocation4], %s243_s29 }
  0xc6   : > { %p347_p13 = pnand %p691_p12, %p576_p6 }
  0xc8   : > { %p348_p0 = pneg %p347_p13 }
  0xca   : > { %505 = dma.done.wait (%p348_p0), %s244_s28, 256  }
  0xcb   : > { %507 = vsyncadd (%p348_p0), %s244_s28, 4294967040  ;;  %p16_p5 = scmp.ge.s32.totalorder %s594_s23, 4   ;;  %s692_s9 = smov %s514_s10 }
  0xcc   : > { %s693_s10 = smov %s518_s11  ;;  %s694_s11 = smov %s603_s26 }
  0xcd   : > { %s695_s12 = smov %s594_s23  ;;  %18 = sbr.rel (!%p16_p5) target bundleno = 6 (0x6), region = 77 }
  0xd2   :  { %250 = vsyncpa [#allocation3], 1 }
  0xd3   :  { %252 = vsyncpa [#allocation3 + $0x1], 1 }
  0xd4   :  { %253 = vsyncpa [#allocation6], 1 }
  0xd5   :  { %254 = vsyncpa [#allocation4], 1 }
  0xd6   :  { %256 = vsyncpa [#allocation4 + $0x1], 1 }

</bundles_post_ra>
